<compile_context>
chip_gen: v6e
topology: v6e:2x2x1
jax: 0.10.0
libtpu: 0.0.40
codegen_flags: <defaults>
</compile_context>

<pallas_src>
import functools

import jax
import jax.numpy as jnp
from jax.experimental import pallas as pl
from jax.experimental.pallas import tpu as pltpu


# ---------------- configuration (small, consistent with the module) ----------------
NUM_USERS      = 10
NUM_ITEMS      = 12
VOCAB_SIZE     = 64
MAX_DOC_LEN    = 32     # L
WORD_EMBED_DIM = 16     # D
CTX_WIN_SIZE   = 3      # W
FILTERS_NUM    = 8      # F
OUTPUT_SIZE    = 8      # O
BATCH          = 4      # B
# dropout_rate > 0 in the module is inference-identity here (eval mode).


def deepconn_kernel(x_ref, cw_ref, cb_ref, fw_ref, fb_ref, out_ref, *,
                    filters_num, output_size, l_out):
    """Fused user+item towers: conv (im2col matmul) + ReLU + max-pool + FC + rating."""
    two, bp, l_pad, wd = x_ref.shape
    F = filters_num
    O = output_size

    # One batched MXU matmul for both towers and the whole per-step batch chunk.
    x = x_ref[...].reshape(two * bp * l_pad, wd)                        # (2*Bp*Lp, W*D)
    s = jnp.dot(x, cw_ref[...], preferred_element_type=jnp.float32)     # (2*Bp*Lp, 2F)
    s = jnp.maximum(s + cb_ref[...], 0.0)                               # bias + ReLU (>= 0)

    # Global max-pool over valid conv positions.  Padded positions are zeroed, which is
    # a no-op for the max since ReLU outputs are >= 0.
    s4 = s.reshape(two, bp, l_pad, two * F)
    pos = jax.lax.broadcasted_iota(jnp.int32, s4.shape, dimension=2)
    s4 = jnp.where(pos < l_out, s4, 0.0)
    pooled = jnp.max(s4, axis=2)                                        # (2, Bp, 2F)

    # Fused FC for both towers via the block-diagonal (2F, 2O) weight.
    r = jnp.dot(pooled.reshape(two * bp, two * F), fw_ref[...],
                preferred_element_type=jnp.float32) + fb_ref[...]       # (2*Bp, 2O)
    u = r[0:bp, 0:O]                 # user tower features  (Bp, O)
    i = r[bp:2 * bp, O:2 * O]        # item tower features  (Bp, O)

    # TODO(synk): DeepCoNN_RatingPred is not provided in the reference source; use the
    # standard DeepCoNN interaction (dot product of user/item features) as the rating.
    rating = jnp.sum(u * i, axis=-1, keepdims=True)                     # (Bp, 1)

    # Single lane-dense packed write: [u_fea | i_fea | rating].
    out_ref[...] = jnp.concatenate([u, i, rating], axis=-1).reshape(out_ref.shape)


def deepconn_forward(user_doc_embed, item_doc_embed, params):
    """user_doc_embed/item_doc_embed: (B, L, D) float32 -> (u_fea, i_fea, rating)."""
    B, L, D = user_doc_embed.shape
    W = CTX_WIN_SIZE
    F = FILTERS_NUM
    O = OUTPUT_SIZE
    l_out = L - W + 1
    l_pad = ((l_out + 7) // 8) * 8          # sublane-align the conv-position axis

    # --- wrapper-side im2col (kernel-row major, embed-dim fastest; matches PyTorch
    #     Conv2d weight flattening (F,1,W,D) -> (F, W*D)) -------------------------------
    def im2col(x):
        cols = jnp.concatenate([x[:, o:o + l_out, :] for o in range(W)], axis=-1)  # (B, l_out, W*D)
        return jnp.pad(cols, ((0, 0), (0, l_pad - l_out), (0, 0)))                 # (B, l_pad, W*D)

    u_win = im2col(user_doc_embed)
    i_win = im2col(item_doc_embed)
    x_all = jnp.stack([u_win, i_win], axis=0)                        # (2, B, l_pad, W*D)

    # --- fused weights -----------------------------------------------------------------
    conv_w = jnp.concatenate([params["u_conv_w"], params["i_conv_w"]], axis=-1)  # (W*D, 2F)
    conv_b = jnp.concatenate([params["u_conv_b"], params["i_conv_b"]], axis=-1)  # (1, 2F)
    zFO = jnp.zeros((F, O), jnp.float32)
    fc_w = jnp.concatenate(
        [jnp.concatenate([params["u_fc_w"], zFO], axis=1),
         jnp.concatenate([zFO, params["i_fc_w"]], axis=1)], axis=0)               # (2F, 2O)
    fc_b = jnp.concatenate([params["u_fc_b"], params["i_fc_b"]], axis=-1)         # (1, 2O)

    # --- grid: 2 steps (megacore-friendly on v7x; 2 cheap steps on v5e/v6e) -------------
    G = 2 if (B % 2 == 0 and B >= 2) else 1
    Bp = B // G
    PACK = 2 * O + 1

    kernel = functools.partial(deepconn_kernel,
                               filters_num=F, output_size=O, l_out=l_out)

    out = pl.pallas_call(
        kernel,
        out_shape=jax.ShapeDtypeStruct((G, Bp, PACK), jnp.float32),
        grid_spec=pltpu.PrefetchScalarGridSpec(
            num_scalar_prefetch=0,
            grid=(G,),
            in_specs=[
                pl.BlockSpec((2, Bp, l_pad, W * D), lambda g: (0, g, 0, 0)),
                pl.BlockSpec((W * D, 2 * F), lambda g: (0, 0)),
                pl.BlockSpec((1, 2 * F), lambda g: (0, 0)),
                pl.BlockSpec((2 * F, 2 * O), lambda g: (0, 0)),
                pl.BlockSpec((1, 2 * O), lambda g: (0, 0)),
            ],
            out_specs=pl.BlockSpec((1, Bp, PACK), lambda g: (g, 0, 0)),
        ),
        compiler_params=pltpu.CompilerParams(
            dimension_semantics=("parallel",)),
    )(x_all, conv_w, conv_b, fc_w, fc_b)

    out = out.reshape(B, PACK)
    u_fea = out[:, 0:O]
    i_fea = out[:, O:2 * O]
    rating = out[:, 2 * O]
    return u_fea, i_fea, rating


def deepconn_reference(user_doc_embed, item_doc_embed, params):
    """Plain-JAX reference (independent per-tower math) for correctness checking."""
    W = CTX_WIN_SIZE

    def tower(x, cw, cb, fw, fb):
        B, L, D = x.shape
        l_out = L - W + 1
        cols = jnp.concatenate([x[:, o:o + l_out, :] for o in range(W)], axis=-1)  # (B, l_out, W*D)
        s = jnp.maximum(jnp.einsum('blk,kf->blf', cols, cw) + cb, 0.0)
        fea = jnp.max(s, axis=1)                                                   # (B, F)
        return fea @ fw + fb

    u = tower(user_doc_embed, params["u_conv_w"], params["u_conv_b"],
              params["u_fc_w"], params["u_fc_b"])
    i = tower(item_doc_embed, params["i_conv_w"], params["i_conv_b"],
              params["i_fc_w"], params["i_fc_b"])
    return u, i, jnp.sum(u * i, axis=-1)


def init_params(key):
    """Deterministic synthetic parameters matching the module's __init__ shapes."""
    ks = jax.random.split(key, 8)
    L, D, W, F, O = MAX_DOC_LEN, WORD_EMBED_DIM, CTX_WIN_SIZE, FILTERS_NUM, OUTPUT_SIZE

    # frozen "embedding tables"
    uid_userDoc = jax.random.randint(ks[0], (NUM_USERS, L), 0, VOCAB_SIZE).astype(jnp.float32)
    iid_itemDoc = jax.random.randint(ks[1], (NUM_ITEMS, L), 0, VOCAB_SIZE).astype(jnp.float32)
    wid_wEmbed  = jax.random.normal(ks[2], (VOCAB_SIZE, D), jnp.float32) * 0.1

    # conv weights: PyTorch (F, 1, W, D), xavier_normal; reshaped to (W*D, F) for im2col matmul
    def xavier_conv(k):
        fan_in, fan_out = W * D, F
        std = (2.0 / (fan_in + fan_out)) ** 0.5
        w = jax.random.normal(k, (F, 1, W, D), jnp.float32) * std
        return w.reshape(F, W * D).T                     # (W*D, F)

    u_conv_w = xavier_conv(ks[3])
    i_conv_w = xavier_conv(ks[4])
    conv_b = jnp.full((1, F), 0.1, jnp.float32)

    # fc: PyTorch Linear(F, O) weight (O, F) ~ U(-0.1, 0.1); stored transposed as (F, O)
    u_fc_w = jax.random.uniform(ks[5], (O, F), jnp.float32, -0.1, 0.1).T
    i_fc_w = jax.random.uniform(ks[6], (O, F), jnp.float32, -0.1, 0.1).T
    fc_b = jnp.full((1, O), 0.1, jnp.float32)

    return {
        "uid_userDoc": uid_userDoc, "iid_itemDoc": iid_itemDoc, "wid_wEmbed": wid_wEmbed,
        "u_conv_w": u_conv_w, "u_conv_b": conv_b,
        "i_conv_w": i_conv_w, "i_conv_b": conv_b,
        "u_fc_w": u_fc_w, "u_fc_b": fc_b,
        "i_fc_w": i_fc_w, "i_fc_b": fc_b,
    }


def embed_docs(params, batch_uid, batch_iid):
    """Glue: id -> doc word-ids -> word embeddings (plain JAX gathers)."""
    user_doc = params["uid_userDoc"][batch_uid].astype(jnp.int32)   # (B, L)
    item_doc = params["iid_itemDoc"][batch_iid].astype(jnp.int32)   # (B, L)
    user_doc_embed = params["wid_wEmbed"][user_doc]                 # (B, L, D)
    item_doc_embed = params["wid_wEmbed"][item_doc]                 # (B, L, D)
    return user_doc_embed, item_doc_embed


if __name__ == "__main__":
    key = jax.random.PRNGKey(0)
    pkey, ukey, ikey = jax.random.split(key, 3)
    params = init_params(pkey)

    batch_uid = jax.random.randint(ukey, (BATCH,), 0, NUM_USERS)
    batch_iid = jax.random.randint(ikey, (BATCH,), 0, NUM_ITEMS)

    user_doc_embed, item_doc_embed = embed_docs(params, batch_uid, batch_iid)

    u_fea, i_fea, rating = deepconn_forward(user_doc_embed, item_doc_embed, params)
    jax.block_until_ready((u_fea, i_fea, rating))

    assert u_fea.shape == (BATCH, OUTPUT_SIZE)
    assert i_fea.shape == (BATCH, OUTPUT_SIZE)
    assert rating.shape == (BATCH,)

    # sanity check against the plain-JAX reference (validates the tower fusion)
    u_ref, i_ref, r_ref = deepconn_reference(user_doc_embed, item_doc_embed, params)
    assert jnp.allclose(u_fea, u_ref, atol=2e-2, rtol=2e-2)
    assert jnp.allclose(i_fea, i_ref, atol=2e-2, rtol=2e-2)
    assert jnp.allclose(rating, r_ref, atol=2e-2, rtol=2e-2)

    print("KERNEL_OK")
</pallas_src>

<mosaic_0001>
module attributes {stable_mosaic.version = 11 : i64} {
  func.func @deepconn_kernel(%arg0: i32, %arg1: memref<2x2x32x48xf32, #tpu.memory_space<vmem>>, %arg2: memref<48x16xf32, #tpu.memory_space<vmem>>, %arg3: memref<1x16xf32, #tpu.memory_space<vmem>>, %arg4: memref<16x16xf32, #tpu.memory_space<vmem>>, %arg5: memref<1x16xf32, #tpu.memory_space<vmem>>, %arg6: memref<1x2x17xf32, #tpu.memory_space<vmem>>) attributes {dimension_semantics = [#tpu.dimension_semantics<parallel>], iteration_bounds = array<i64: 2>, scalar_prefetch = 0 : i64, scratch_operands = 0 : i64, tpu.core_type = #tpu.core_type<tc>, window_params = [{transform_indices = @transform_0, window_bounds = array<i64: 2, 2, 32, 48>}, {pipeline_mode = #tpu.pipeline_mode<synchronous>, transform_indices = @transform_1, window_bounds = array<i64: 48, 16>}, {pipeline_mode = #tpu.pipeline_mode<synchronous>, transform_indices = @transform_2, window_bounds = array<i64: 1, 16>}, {pipeline_mode = #tpu.pipeline_mode<synchronous>, transform_indices = @transform_3, window_bounds = array<i64: 16, 16>}, {pipeline_mode = #tpu.pipeline_mode<synchronous>, transform_indices = @transform_4, window_bounds = array<i64: 1, 16>}, {transform_indices = @transform_5, window_bounds = array<i64: 1, 2, 17>}]} {
    %c0 = arith.constant 0 : index
    %c0_0 = arith.constant 0 : index
    %c0_1 = arith.constant 0 : index
    %c0_2 = arith.constant 0 : index
    %0 = vector.load %arg1[%c0, %c0_0, %c0_1, %c0_2] : memref<2x2x32x48xf32, #tpu.memory_space<vmem>>, vector<2x2x32x48xf32>
    %1 = vector.shape_cast %0 : vector<2x2x32x48xf32> to vector<128x48xf32>
    %c0_3 = arith.constant 0 : index
    %c0_4 = arith.constant 0 : index
    %2 = vector.load %arg2[%c0_3, %c0_4] : memref<48x16xf32, #tpu.memory_space<vmem>>, vector<48x16xf32>
    %cst = arith.constant dense<0.000000e+00> : vector<128x16xf32>
    %3 = tpu.matmul %1, %2, %cst {dimension_numbers = #tpu.dot_dimension_numbers<[1], [0], [0], [1], [0, 0, 1, 1], [], []>} : vector<128x48xf32>, vector<48x16xf32>, vector<128x16xf32> -> vector<128x16xf32>
    %c0_5 = arith.constant 0 : index
    %c0_6 = arith.constant 0 : index
    %4 = vector.load %arg3[%c0_5, %c0_6] : memref<1x16xf32, #tpu.memory_space<vmem>>, vector<1x16xf32>
    %5 = vector.broadcast %4 : vector<1x16xf32> to vector<128x16xf32>
    %6 = arith.addf %3, %5 : vector<128x16xf32>
    %cst_7 = arith.constant 0.000000e+00 : f32
    %7 = vector.broadcast %cst_7 : f32 to vector<128x16xf32>
    %8 = arith.maximumf %6, %7 : vector<128x16xf32>
    %9 = vector.shape_cast %8 : vector<128x16xf32> to vector<2x2x32x16xf32>
    %10 = tpu.iota {dimensions = array<i32: 2>} : vector<2x2x32x16xi32>
    %c30_i32 = arith.constant 30 : i32
    %11 = vector.broadcast %c30_i32 : i32 to vector<2x2x32x16xi32>
    %12 = arith.cmpi slt, %10, %11 : vector<2x2x32x16xi32>
    %cst_8 = arith.constant 0.000000e+00 : f32
    %13 = vector.broadcast %cst_8 : f32 to vector<2x2x32x16xf32>
    %14 = arith.select %12, %9, %13 : vector<2x2x32x16xi1>, vector<2x2x32x16xf32>
    %cst_9 = arith.constant dense<0xFF800000> : vector<2x2x16xf32>
    %15 = vector.multi_reduction <maximumf>, %14, %cst_9 [2] : vector<2x2x32x16xf32> to vector<2x2x16xf32>
    %16 = vector.shape_cast %15 : vector<2x2x16xf32> to vector<4x16xf32>
    %c0_10 = arith.constant 0 : index
    %c0_11 = arith.constant 0 : index
    %17 = vector.load %arg4[%c0_10, %c0_11] : memref<16x16xf32, #tpu.memory_space<vmem>>, vector<16x16xf32>
    %cst_12 = arith.constant dense<0.000000e+00> : vector<4x16xf32>
    %18 = tpu.matmul %16, %17, %cst_12 {dimension_numbers = #tpu.dot_dimension_numbers<[1], [0], [0], [1], [0, 0, 1, 1], [], []>} : vector<4x16xf32>, vector<16x16xf32>, vector<4x16xf32> -> vector<4x16xf32>
    %c0_13 = arith.constant 0 : index
    %c0_14 = arith.constant 0 : index
    %19 = vector.load %arg5[%c0_13, %c0_14] : memref<1x16xf32, #tpu.memory_space<vmem>>, vector<1x16xf32>
    %20 = vector.broadcast %19 : vector<1x16xf32> to vector<4x16xf32>
    %21 = arith.addf %18, %20 : vector<4x16xf32>
    %22 = vector.extract_strided_slice %21 {offsets = [0, 0], sizes = [2, 8], strides = [1, 1]} : vector<4x16xf32> to vector<2x8xf32>
    %23 = vector.extract_strided_slice %21 {offsets = [2, 8], sizes = [2, 8], strides = [1, 1]} : vector<4x16xf32> to vector<2x8xf32>
    %24 = arith.mulf %22, %23 : vector<2x8xf32>
    %cst_15 = arith.constant dense<0.000000e+00> : vector<2xf32>
    %25 = vector.multi_reduction <add>, %24, %cst_15 [1] : vector<2x8xf32> to vector<2xf32>
    %26 = vector.shape_cast %25 : vector<2xf32> to vector<2x1xf32>
    %27 = tpu.concatenate %22, %23, %26 in 1 : vector<2x8xf32>, vector<2x8xf32>, vector<2x1xf32> -> vector<2x17xf32>
    %28 = vector.shape_cast %27 : vector<2x17xf32> to vector<1x2x17xf32>
    %c0_16 = arith.constant 0 : index
    %c0_17 = arith.constant 0 : index
    %c0_18 = arith.constant 0 : index
    %29 = vector.load %arg6[%c0_16, %c0_17, %c0_18] : memref<1x2x17xf32, #tpu.memory_space<vmem>>, vector<1x2x17xf32>
    tpu.vector_store %arg6[%c0_16, %c0_17, %c0_18], %28 {strides = array<i32>} : memref<1x2x17xf32, #tpu.memory_space<vmem>>, vector<1x2x17xf32>,
    return
  }
  func.func @transform_0(%arg0: i32) -> (i32, i32, i32, i32) {
    %c0_i32 = arith.constant 0 : i32
    %c0_i32_0 = arith.constant 0 : i32
    %c0_i32_1 = arith.constant 0 : i32
    %c0_i32_2 = arith.constant 0 : i32
    return %c0_i32, %arg0, %c0_i32_0, %c0_i32_1 : i32, i32, i32, i32
  }
  func.func @transform_1(%arg0: i32) -> (i32, i32) {
    %c0_i32 = arith.constant 0 : i32
    %c0_i32_0 = arith.constant 0 : i32
    %c0_i32_1 = arith.constant 0 : i32
    return %c0_i32, %c0_i32_0 : i32, i32
  }
  func.func @transform_2(%arg0: i32) -> (i32, i32) {
    %c0_i32 = arith.constant 0 : i32
    %c0_i32_0 = arith.constant 0 : i32
    %c0_i32_1 = arith.constant 0 : i32
    return %c0_i32, %c0_i32_0 : i32, i32
  }
  func.func @transform_3(%arg0: i32) -> (i32, i32) {
    %c0_i32 = arith.constant 0 : i32
    %c0_i32_0 = arith.constant 0 : i32
    %c0_i32_1 = arith.constant 0 : i32
    return %c0_i32, %c0_i32_0 : i32, i32
  }
  func.func @transform_4(%arg0: i32) -> (i32, i32) {
    %c0_i32 = arith.constant 0 : i32
    %c0_i32_0 = arith.constant 0 : i32
    %c0_i32_1 = arith.constant 0 : i32
    return %c0_i32, %c0_i32_0 : i32, i32
  }
  func.func @transform_5(%arg0: i32) -> (i32, i32, i32) {
    %c0_i32 = arith.constant 0 : i32
    %c0_i32_0 = arith.constant 0 : i32
    %c0_i32_1 = arith.constant 0 : i32
    return %arg0, %c0_i32, %c0_i32_0 : i32, i32, i32
  }
}

</mosaic_0001>

<bundles_post_ra>
// kernel: tpu_custom_call.1
= control target key start
LH: loop header
LB: loop body
LE: loop exit
PB: predicated region body
PF: predicated region fallthrough
CT: control target
= control target key end

     0   :  { %10 = vsyncpa [#allocation3], 0  ;;  %s1300_s0 = inlined_call_operand.hbm [shape: f32[2,4,32,48], index: 0, kind: input, shape index: {}]   ;;  %s1301_s1 = inlined_call_operand.vmem [shape: f32[48,16], index: 1, kind: input, shape index: {}]   ;;  %s1302_s2 = inlined_call_operand.vmem [shape: f32[1,16], index: 2, kind: input, shape index: {}]   ;;  %s1303_s3 = inlined_call_operand.vmem [shape: f32[16,16], index: 3, kind: input, shape index: {}]   ;;  %s1304_s4 = inlined_call_operand.vmem [shape: f32[1,16], index: 4, kind: input, shape index: {}]   ;;  %s1305_s5 = inlined_call_operand.hbm [shape: f32[2,2,17], index: 5, kind: output, shape index: {}]  }
   0x1   :  { %12 = vsyncpa [#allocation3 + $0x1], 0 }
   0x2   :  { %13 = vsyncpa [#allocation4], 0 }
   0x3   :  { %15 = vsyncpa [#allocation4 + $0x1], 0  ;;  %s1056_s18 = smov 0   ;;  %s1058_s19 = smov 0  }
   0x4   :  { %s1060_s20 = smov 0   ;;  %s1062_s21 = smov 0  }
   0x5 LB: > { %s1077_s22 = sadd.s32 4294967295, %s1015_s21   ;;  %s778_s23 = sadd.s32 4294967294, %s1015_s21   ;;  %s1015_s21 = sphi %s1062_s21, %s1313_s21   ;;  %s1011_s20 = sphi %s1060_s20, %s1312_s20   ;;  %s1007_s19 = sphi %s1058_s19, %s1311_s19   ;;  %s1003_s18 = sphi %s1056_s18, %s1310_s18  }
   0x6   : > { %s1081_s24 = sadd.s32 1, %s1015_s21   ;;  %s28_s25 = sadd.s32 1, %s1011_s20 }
   0x7   : > { %s25_s26 = ssub.s32 %s1015_s21, %s1081_s24  ;;  %p35_p0 = scmp.ne.s32.totalorder %s1011_s20, %s1007_s19 }
   0x8   : > { %p26_p1 = scmp.eq.s32.totalorder %s25_s26, 0  ;;  %p36_p2 = scmp.eq.s32.totalorder %s1015_s21, 0 }
   0x9   : > { %p41_p3 = scmp.ne.s32.totalorder %s1007_s19, %s1003_s18  ;;  %p42_p4 = scmp.eq.s32.totalorder %s1077_s22, 0 }
   0xa   : > { %s1093_s27 = scalar_select %p26_p1, %s1011_s20, %s28_s25  }
   0xb   : > { %p1095_p5 = por %p36_p2, %p35_p0  ;;  %p1099_p6 = por %p42_p4, %p41_p3 }
   0xc   : > { %p149_p7 = scmp.eq.s32.totalorder %s1077_s22, 1  ;;  %p155_p8 = scmp.eq.s32.totalorder %s778_s23, 1 }
   0xd   : > { %p780_p11 = scmp.ge.s32.totalorder %s1015_s21, 2 }
   0xe   : > { %p1104_p9 = por %p149_p7, %p35_p0  ;;  %p1108_p10 = por %p155_p8, %p41_p3 }
   0xf   : > { %183 = sbr.rel (%p780_p11) target bundleno = 33 (0x21), region = 32 }
  0x14   : > { %s187_s7 = sand.u32 1, %s1011_s20   ;;  %s814_s9 = sshll.u32 %s1015_s21, 10 }
  0x15   : > { %s781_s8 = sshll.u32 %s187_s7, 7  ;;  %s198_s13 = scalar_lea.hbm %s1300_s0, %s814_s9 }
  0x16   : > { %s895_s10 = scalar_select %p1095_p5, [#allocation0], [#allocation8] }
  0x17   : > { %s191_s15 = scalar_lea.vmem [#allocation2], %s781_s8  ;;  %s1017_s17 = smov 2048  }
  0x18   : > { %s203_s14 = sld [smem:[%s895_s10]]   ;;  %s211_s16 = sshll.u32 %s191_s15, 4  ;;  %s212_s16 = int_to_ptr.vmem [resolvable:$true] %s211_s16 }
  0x19   : > { %896 = sst [smem:[#allocation7]] (%p1095_p5), %s1017_s17  ;;  %s1018_s23 = smov 1024  }
  0x1a   : > { %897 = sst [smem:[#allocation7 + $0x1]] (%p1095_p5), %s1018_s23  ;;  %s1019_s25 = smov 8  }
  0x1b   : > { %898 = sst [smem:[#allocation7 + $0x2]] (%p1095_p5), %s1019_s25  ;;  %s1020_s26 = smov 128  }
  0x1c   : > { %899 = sst [smem:[#allocation7 + $0x3]] (%p1095_p5), %s1020_s26  ;;  %s188_s10 = scalar_lea.sflag [#allocation3], %s187_s7 }
  0x1d   : > { %900 = sst [smem:[#allocation7 + $0x4]] (%p1095_p5), %s1020_s26  ;;  %s1021_s11 = smov 131072  }
  0x1e   : > { %s785_s9 = sshll.u32 %s203_s14, 26  ;;  %901 = sst [smem:[#allocation7 + $0x5]] (%p1095_p5), %s1019_s25 }
  0x1f   : > { %s786_s8 = sadd.s32 134217728, %s785_s9 }
  0x20   : > { %902 = dma.general (%p1095_p5), %s198_s13, 2048, %s212_s16, %s188_s10, %s1021_s11, [#allocation7], %s786_s8, 0  }
  0x21 PF: > { %p787_p12 = scmp.ge.s32.totalorder %s1015_s21, 1  ;;  %p232_p13 = scmp.lt.s32.totalorder %s1015_s21, 3 }
  0x23   : > { %p233_p0 = pnand %p787_p12, %p232_p13 }
  0x24   : > { %s1139_s12 = sand.u32 (!%p233_p0), 1, %s1007_s19  }
  0x25   : > { %236 = sbr.rel (%p233_p0) target bundleno = 759 (0x2f7), region = 40  ;;  %s788_s14 = sshll.u32 (!%p233_p0), %s1139_s12, 7 }
  0x26   : > { %s239_s15 = scalar_lea.sflag (!%p233_p0), [#allocation3], %s1139_s12  ;;  %s1143_s17 = scalar_lea.vmem (!%p233_p0), [#allocation2], %s788_s14 }
  0x2a   : > { %994 = dma.done.wait (%p1099_p6), %s239_s15, 2048  }
  0x2b   : > { %996 = vsyncadd (%p1099_p6), %s239_s15, 4294965248  ;;  %v291_v0 = vld [vmem:[%s1301_s1 + $0x28] sm:$0xff]  ;;  %v290_v1 = vld [vmem:[%s1301_s1 + $0x20] sm:$0xff]  ;;  %vm299_vm0 = vcmask 392192   ;;  %v1022_v23 = vmov 0.0   ;;  %vm1023_vm1 = vmmov 0   ;;  %v509_v25 = vlaneseq }
  0x2c   : > { %840 = vmatprep.subr.mxu0 %v291_v0  ;;  %883 = vmatprep.subr.mxu1 %v291_v0  ;;  %v289_v2 = vld [vmem:[%s1301_s1 + $0x18] sm:$0xff]  ;;  %v288_v3 = vld [vmem:[%s1301_s1 + $0x10] sm:$0xff]  ;;  %v287_v4 = vld [vmem:[%s1301_s1 + $0x8] sm:$0xff]  ;;  %vm534_vm2 = vcmask 130048   ;;  %vm600_vm4 = vcmask 1041409   ;;  %vm602_vm5 = vcmask 1042434  }
  0x2d   : > { %841 = vmatpush3.msra.mxu0 %v291_v0  ;;  %889 = vmatpush3.msra.mxu1 %v291_v0  ;;  %v286_v5 = vld [vmem:[%s1301_s1] sm:$0xff]  ;;  %v271_v7 = vld [vmem:[%s1143_s17 + $0x8] sm:$0xff]  ;;  %v280_v8 = vld [vmem:[%s1143_s17 + $0x50] sm:$0xff]  ;;  %v510_v27 = vshrl.u32 %v509_v25, 7  ;;  %vm604_vm6 = vcmask 1043459   ;;  %s1024_s25 = smov 120  }
  0x2e   : > { %842 = vmatprep.subr.mxu0 %v290_v1  ;;  %884 = vmatprep.subr.mxu1 %v290_v1  ;;  %v270_v6 = vld [vmem:[%s1143_s17] sm:$0xff]  ;;  %v272_v9 = vld [vmem:[%s1143_s17 + $0x10] sm:$0xff]  ;;  %v281_v10 = vld [vmem:[%s1143_s17 + $0x58] sm:$0xff]  ;;  %vm684_vm7 = vcmask 58368   ;;  %s789_s29 = sshll.u32 %s1139_s12, 1  ;;  %vm689_vm8 = vcmask 64512  }
  0x2f   : > { %843 = vmatpush3.msra.mxu0 %v290_v1  ;;  %890 = vmatpush3.msra.mxu1 %v290_v1  ;;  %v282_v11 = vld [vmem:[%s1143_s17 + $0x60] sm:$0xff]  ;;  %v273_v12 = vld [vmem:[%s1143_s17 + $0x18] sm:$0xff]  ;;  %v283_v14 = vld [vmem:[%s1143_s17 + $0x68] sm:$0xff]  ;;  %v1211_v32 = vadd.s32 24, %v510_v27  ;;  %s810_s26 = sshll.u32 %s1077_s22, 5  ;;  %s268_s9 = scalar_lea.vmem [#allocation5], %s789_s29 }
  0x30   : > { %844 = vmatprep.subr.mxu0 %v289_v2  ;;  %885 = vmatprep.subr.mxu1 %v289_v2  ;;  %v274_v13 = vld [vmem:[%s1143_s17 + $0x20] sm:$0xff]  ;;  %v284_v15 = vld [vmem:[%s1143_s17 + $0x70] sm:$0xff]  ;;  %v275_v16 = vld [vmem:[%s1143_s17 + $0x28] sm:$0xff]  ;;  %s708_s8 = sshll.u32 %s268_s9, 4  ;;  %vm692_vm9 = vcmask 132096   ;;  %s1262_s14 = scalar_lea.hbm %s1305_s5, %s810_s26  ;;  %s709_s8 = int_to_ptr.vmem [resolvable:$true] %s708_s8 }
  0x31   : > { %845 = vmatpush3.msra.mxu0 %v289_v2  ;;  %891 = vmatpush3.msra.mxu1 %v289_v2  ;;  %v276_v17 = vld [vmem:[%s1143_s17 + $0x30] sm:$0xff]  ;;  %v285_v18 = vld [vmem:[%s1143_s17 + $0x78] sm:$0xff]  ;;  %v278_v20 = vld [vmem:[%s1143_s17 + $0x40] sm:$0xff]  ;;  %vm517_vm3 = vcmp.lt.s32.totalorder %v1211_v32, 30  ;;  %s695_s15 = scalar_lea.sflag [#allocation4], %s1139_s12  ;;  %s951_s28 = scalar_lea.vmem %s709_s8, 32 }
  0x32   : > { %846 = vmatprep.subr.mxu0 %v288_v3  ;;  %886 = vmatprep.subr.mxu1 %v288_v3  ;;  %v277_v19 = vld [vmem:[%s1143_s17 + $0x38] sm:$0xff]  ;;  %v279_v21 = vld [vmem:[%s1143_s17 + $0x48] sm:$0xff]  ;;  %v587_v24 = vld [vmem:[%s1303_s3] sm:$0xff]  ;;  %p952_p1 = scmp.ne.s32.totalorder %s709_s8, %s951_s28  ;;  %s1025_s22 = smov [#allocation5]  }
  0x33   : > { %847 = vmatpush3.msra.mxu0 %v288_v3  ;;  %892 = vmatpush3.msra.mxu1 %v288_v3  ;;  %v588_v22 = vld [vmem:[%s1303_s3 + $0x8] sm:$0xff]  ;;  %v1208_v26 = vld [vmem:[%s1302_s2] ss:$0 sm:$0xff]  ;;  %s955_s7 = sshll.u32 %s1025_s22, 4  ;;  %s956_s7 = int_to_ptr.vmem [resolvable:$false] %s955_s7 }
  0x34   : > { %848 = vmatprep.subr.mxu0 %v287_v4  ;;  %887 = vmatprep.subr.mxu1 %v287_v4  ;;  %p953_p2 = pnand %p952_p1, %p1104_p9  ;;  %s957_s13 = scalar_lea.vmem %s956_s7, 64 }
  0x35   : > { %849 = vmatpush3.msra.mxu0 %v287_v4  ;;  %893 = vmatpush3.msra.mxu1 %v287_v4  ;;  %p958_p4 = scmp.lt.s32.totalorder %s709_s8, %s956_s7  ;;  %p959_p5 = scmp.lt.s32.totalorder %s957_s13, %s951_s28 }
  0x36   : > { %850 = vmatprep.subr.mxu0 %v286_v5  ;;  %888 = vmatprep.subr.mxu1 %v286_v5  ;;  %p954_p3 = pneg %p953_p2 }
  0x37   : > { %851 = vmatpush3.msra.mxu0 %v286_v5  ;;  %852 = vmatprep.mubr.msk.f32.mxu0 %vm299_vm0, %v270_v6  ;;  %p960_p6 = por %p959_p5, %p958_p4 }
  0x38   : > { %894 = vmatpush3.msra.mxu1 %v286_v5  ;;  %853 = vmatmul.mubr.msk.f32.vlgmr.msra.gmra.mxu0 %vm299_vm0, %v271_v7 }
  0x39   : > { %867 = vmatprep.mubr.msk.f32.mxu1 %vm299_vm0, %v280_v8  ;;  %855 = vmatprep.mubr.msk.f32.mxu0 %vm299_vm0, %v272_v9  ;;  %p961_p7 = pnand %p960_p6, %p954_p3 }
  0x3a   : > { %868 = vmatmul.mubr.msk.f32.vlgmr.msra.gmra.mxu1 %vm299_vm0, %v281_v10  ;;  %876 = vmatprep.subr.mxu1 %v1022_v23 }
  0x3b   : > { %870 = vmatprep.mubr.msk.f32.mxu1 %vm299_vm0, %v282_v11  ;;  %877 = vmatpush3.msra.mxu1 %v588_v22 }
  0x3c   : > { %856 = vmatmul.mubr.msk.f32.gmra.mxu0 %vm299_vm0, %v273_v12  ;;  %878 = vmatprep.subr.mxu1 %v1022_v23 }
  0x3d   : > { %858 = vmatprep.mubr.msk.f32.mxu0 %vm299_vm0, %v274_v13  ;;  %879 = vmatpush3.msra.mxu1 %v587_v24 }
  0x3e   : > { %871 = vmatmul.mubr.msk.f32.gmra.mxu1 %vm299_vm0, %v283_v14 }
  0x3f   : > { %873 = vmatprep.mubr.msk.f32.mxu1 %vm299_vm0, %v284_v15 }
  0x40   : > { %859 = vmatmul.mubr.msk.f32.gmra.mxu0 %vm299_vm0, %v275_v16 }
  0x41   : > { %861 = vmatprep.mubr.msk.f32.mxu0 %vm299_vm0, %v276_v17 }
  0x42   : > { %874 = vmatmul.mubr.msk.f32.gmra.mxu1 %vm299_vm0, %v285_v18 }
  0x43   : > { %880 = vmatprep.mubr.msk.f32.mxu1 %vm1023_vm1, %v1022_v23 }
  0x44   : > { %862 = vmatmul.mubr.msk.f32.gmra.mxu0 %vm299_vm0, %v277_v19 }
  0x45   : > { %864 = vmatprep.mubr.msk.f32.mxu0 %vm299_vm0, %v278_v20 }
  0x48   : > { %865 = vmatmul.mubr.msk.f32.gmra.mxu0 %vm299_vm0, %v279_v21 }
  0xf8   : > { %v854_v28 = vpop.f32.mrf.mxu0 }
  0xf9   : > { %v420_v29 = vadd.f32 %v854_v28, %v1208_v26 }
  0xfa   : > { %v869_v30 = vpop.f32.mrf.mxu1  ;;  %v414_v31 = vpop.f32.mrf.mxu0 }
  0xfb   : > { %v415_v33 = vadd.f32 %v1208_v26, %v414_v31  ;;  %v494_v37 = vmax.f32 %v420_v29, 0.0  ;;  %v470_v12 = vadd.f32 %v869_v30, %v1208_v26 }
  0xfc   : > { %v464_v34 = vpop.f32.mrf.mxu1  ;;  %v857_v35 = vpop.f32.mrf.mxu0 }
  0xfd   : > { %v493_v36 = vmax.f32 %v415_v33, 0.0  ;;  %v430_v38 = vadd.f32 %v857_v35, %v1208_v26  ;;  %v536_v50 = vsel %vm534_vm2, %v494_v37, -inf  ;;  %v465_v17 = vadd.f32 %v1208_v26, %v464_v34 }
  0xfe   : > { %v872_v39 = vpop.f32.mrf.mxu1  ;;  %v424_v40 = vpop.f32.mrf.mxu0  ;;  %v504_v30 = vmax.f32 %v470_v12, 0.0 }
  0xff   : > { %v480_v41 = vadd.f32 %v872_v39, %v1208_v26  ;;  %v535_v42 = vsel %vm534_vm2, %v493_v36, -inf  ;;  %v496_v43 = vmax.f32 %v430_v38, 0.0  ;;  %v425_v44 = vadd.f32 %v1208_v26, %v424_v40 }
 0x100   : > { %v474_v45 = vpop.f32.mrf.mxu1  ;;  %v860_v46 = vpop.f32.mrf.mxu0  ;;  %v537_v55 = vmax.f32 %v535_v42, %v536_v50  ;;  %v503_v35 = vmax.f32 %v465_v17, 0.0 }
 0x101   : > { %v506_v47 = vmax.f32 %v480_v41, 0.0  ;;  %v475_v48 = vadd.f32 %v1208_v26, %v474_v45  ;;  %v440_v49 = vadd.f32 %v860_v46, %v1208_v26  ;;  %v521_v51 = vsel %vm517_vm3, %v496_v43, 0.0 }
 0x102   : > { %v495_v52 = vmax.f32 %v425_v44, 0.0  ;;  %v875_v53 = vpop.f32.mrf.mxu1  ;;  %v434_v54 = vpop.f32.mrf.mxu0  ;;  %v540_v58 = vsel %vm534_vm2, %v521_v51, -inf  ;;  %v564_v45 = vsel %vm534_vm2, %v503_v35, -inf }
 0x103   : > { %v575_v56 = vsel %vm534_vm2, %v506_v47, -inf  ;;  %v505_v57 = vmax.f32 %v475_v48, 0.0  ;;  %v490_v60 = vadd.f32 %v875_v53, %v1208_v26  ;;  %v435_v61 = vadd.f32 %v1208_v26, %v434_v54 }
 0x104   : > { %v538_v59 = vsel %vm534_vm2, %v495_v52, -inf  ;;  %v484_v62 = vpop.f32.mrf.mxu1  ;;  %v863_v63 = vpop.f32.mrf.mxu0  ;;  %v498_v2 = vmax.f32 %v440_v49, 0.0 }
 0x105   : > { %v539_v0 = vmax.f32 %v537_v55, %v538_v59  ;;  %v574_v1 = vsel %vm534_vm2, %v505_v57, -inf  ;;  %v485_v3 = vadd.f32 %v1208_v26, %v484_v62  ;;  %v508_v5 = vmax.f32 %v490_v60, 0.0 }
 0x106   : > { %v576_v4 = vmax.f32 %v574_v1, %v575_v56  ;;  %v497_v6 = vmax.f32 %v435_v61, 0.0  ;;  %v450_v7 = vadd.f32 %v863_v63, %v1208_v26  ;;  %v444_v8 = vpop.f32.mrf.mxu0  ;;  %v549_v20 = vsel %vm534_vm2, %v498_v2, -inf }
 0x107   : > { %v541_v9 = vmax.f32 %v539_v0, %v540_v58  ;;  %v507_v10 = vmax.f32 %v485_v3, 0.0  ;;  %v445_v11 = vadd.f32 %v1208_v26, %v444_v8  ;;  %v533_v13 = vsel %vm517_vm3, %v508_v5, 0.0  ;;  %v807_v8 = vld [vmem:[%s1304_s4] ss:$0 sm:$0xff] }
 0x108   : > { %v548_v14 = vsel %vm534_vm2, %v497_v6, -inf  ;;  %v500_v15 = vmax.f32 %v450_v7, 0.0  ;;  %v866_v16 = vpop.f32.mrf.mxu0  ;;  %v579_v18 = vsel %vm534_vm2, %v533_v13, -inf }
 0x109   : > { %v577_v19 = vsel %vm534_vm2, %v507_v10, -inf  ;;  %v499_v22 = vmax.f32 %v445_v11, 0.0  ;;  %v460_v23 = vadd.f32 %v866_v16, %v1208_v26  ;;  %v542_v25 = vrot.slane %v541_v9, 4 }
 0x10a   : > { %v578_v21 = vmax.f32 %v576_v4, %v577_v19  ;;  %v454_v24 = vpop.f32.mrf.mxu0  ;;  %v550_v27 = vmax.f32 %v548_v14, %v549_v20  ;;  %v525_v28 = vsel %vm517_vm3, %v500_v15, 0.0 }
 0x10b   : > { %v455_v29 = vadd.f32 %v1208_v26, %v454_v24  ;;  %v551_v33 = vsel %vm534_vm2, %v499_v22, -inf  ;;  %v502_v34 = vmax.f32 %v460_v23, 0.0  ;;  %v553_v39 = vsel %vm534_vm2, %v525_v28, -inf }
 0x10c   : > { %v580_v31 = vmax.f32 %v578_v21, %v579_v18  ;;  %v552_v36 = vmax.f32 %v550_v27, %v551_v33  ;;  %v543_v40 = vmax.f32 %v541_v9, %v542_v25  ;;  %v529_v26 = vsel %vm517_vm3, %v504_v30, 0.0 }
 0x10d   : > { %v501_v37 = vmax.f32 %v455_v29, 0.0  ;;  %v562_v42 = vsel %vm534_vm2, %v502_v34, -inf  ;;  %v566_v49 = vsel %vm534_vm2, %v529_v26, -inf }
 0x10e   : > { %v581_v38 = vrot.slane %v580_v31, 4  ;;  %v554_v41 = vmax.f32 %v552_v36, %v553_v39  ;;  %v544_v50 = vrot.slane %v543_v40, 2 }
 0x10f   : > { %v561_v43 = vsel %vm534_vm2, %v501_v37, -inf }
 0x110   : > { %v563_v44 = vmax.f32 %v561_v43, %v562_v42  ;;  %v582_v46 = vmax.f32 %v580_v31, %v581_v38  ;;  %v555_v47 = vrot.slane %v554_v41, 4  ;;  %v545_v56 = vmax.f32 %v543_v40, %v544_v50 }
 0x112   : > { %v565_v48 = vmax.f32 %v563_v44, %v564_v45  ;;  %v556_v51 = vmax.f32 %v554_v41, %v555_v47  ;;  %v583_v53 = vrot.slane %v582_v46, 2  ;;  %v546_v61 = vrot.slane %v545_v56, 1 }
 0x114   : > { %v567_v52 = vmax.f32 %v565_v48, %v566_v49  ;;  %v557_v54 = vrot.slane %v556_v51, 2  ;;  %v584_v59 = vmax.f32 %v582_v46, %v583_v53  ;;  %v547_v2 = vmax.f32 %v545_v56, %v546_v61 }
 0x116   : > { %v568_v55 = vrot.slane %v567_v52, 4  ;;  %v558_v57 = vmax.f32 %v556_v51, %v557_v54  ;;  %v585_v63 = vrot.slane %v584_v59, 1 }
 0x118   : > { %v569_v58 = vmax.f32 %v567_v52, %v568_v55  ;;  %v559_v32 = vrot.slane %v558_v57, 1  ;;  %v586_v4 = vmax.f32 %v584_v59, %v585_v63 }
 0x11a   : > { %v570_v60 = vrot.slane %v569_v58, 2  ;;  %v560_v0 = vmax.f32 %v558_v57, %v559_v32 }
 0x11c   : > { %v571_v62 = vmax.f32 %v569_v58, %v570_v60  ;;  %v601_v5 = vsel %vm600_vm4, %v560_v0, %v547_v2 }
 0x11e   : > { %v572_v1 = vrot.slane %v571_v62, 1 }
 0x120   : > { %v573_v3 = vmax.f32 %v571_v62, %v572_v1 }
 0x122   : > { %v603_v6 = vsel %vm602_vm5, %v573_v3, %v601_v5 }
 0x123   : > { %v605_v7 = vsel %vm604_vm6, %v586_v4, %v603_v6 }
 0x124   : > { %881 = vmatmul.mubr.msk.f32.vlgmr.msra.gmra.mxu1 %vm534_vm2, %v605_v7 }
 0x1e4   : > { %v674_v9 = vpop.f32.mrf.mxu1 }
 0x1e5   : > { %v675_v10 = vadd.f32 %v807_v8, %v674_v9 }
 0x1e6   : > { %v882_v11 = vpop.f32.mrf.mxu1 }
 0x1e7   : > { %v679_v12 = vrot.slane %v675_v10, 2 }
 0x1e9   : > { %680 = vrot.lane.b32.xlu0 %v679_v12, %s1024_s25  ;;  %v690_v17 = vsel %vm689_vm8, %v675_v10, %v679_v12 }
 0x25b   : > { %v681_v13 = vpop.permute.xlu0 %680 }
 0x25c   : > { %v683_v14 = vmul.f32 %v681_v13, %v675_v10 }
 0x25e   : > { %v685_v15 = vsel %vm684_vm7, %v683_v14, 0.0 }
 0x25f   : > { %686 = vadd.xlane.f32.xlu0 %v685_v15 }
 0x2e8   : > { %v687_v16 = vpop.xlane.xlu0 %686 }
 0x2e9   : > { %v691_v18 = vsel %vm534_vm2, %v690_v17, %v687_v16 }
 0x2ea   : > { %693 = vst.msk [vmem:[%s268_s9] sm:$0x3] %vm692_vm9, %v691_v18 }
 0x2eb   : > { %964 = shalt.err (!%p961_p7)
}
 0x2ec   : > { %s965_s17 = scalar_lea.hbm %s1262_s14, 32  ;;  %s969_s23 = scalar_lea.hbm %s1305_s5, 64 }
 0x2ed   : > { %p966_p8 = scmp.ne.s32.totalorder %s1262_s14, %s965_s17  ;;  %p970_p0 = scmp.lt.s32.totalorder %s1262_s14, %s1305_s5 }
 0x2ee   : > { %p971_p1 = scmp.lt.s32.totalorder %s969_s23, %s965_s17 }
 0x2ef   : > { %p967_p12 = pnand %p966_p8, %p1104_p9 }
 0x2f0   : > { %p972_p2 = por %p971_p1, %p970_p0 }
 0x2f1   : > { %p968_p13 = pneg %p967_p12 }
 0x2f3   : > { %p973_p3 = pnand %p972_p2, %p968_p13 }
 0x2f5   : > { %976 = shalt.err (!%p973_p3)
}
 0x2f6   : > { %904 = dma.vmem_to_hbm [thread:$0]  (%p1104_p9), %s709_s8, 32, %s1262_s14, %s695_s15  }
 0x2f7 PF: > { %s720_s26 = sand.u32 1, %s1003_s18   ;;  %p907_p4 = pnand %p780_p11, %p1108_p10 }
 0x2f8   : > { %s721_s9 = scalar_lea.sflag [#allocation4], %s720_s26 }
 0x2f9   : > { %p908_p5 = pneg %p907_p4 }
 0x2fb   : > { %998 = dma.done.wait (%p908_p5), %s721_s9, 32  }
 0x2fc   : > { %1000 = vsyncadd (%p908_p5), %s721_s9, 4294967264  ;;  %p18_p6 = scmp.ge.s32.totalorder %s1081_s24, 4   ;;  %s1310_s18 = smov %s1007_s19 }
 0x2fd   : > { %s1311_s19 = smov %s1011_s20  ;;  %s1312_s20 = smov %s1093_s27 }
 0x2fe   : > { %s1313_s21 = smov %s1081_s24  ;;  %20 = sbr.rel (!%p18_p6) target bundleno = 5 (0x5), region = 90 }
 0x303   :  { %726 = vsyncpa [#allocation3], 1 }
 0x304   :  { %728 = vsyncpa [#allocation3 + $0x1], 1 }
 0x305   :  { %729 = vsyncpa [#allocation4], 1 }
 0x306   :  { %731 = vsyncpa [#allocation4 + $0x1], 1 }

</bundles_post_ra>
